<compile_context>
chip_gen: v7x
topology: tpu7x:2x2x1
jax: 0.10.0
libtpu: 0.0.40
codegen_flags: <defaults>
</compile_context>

<pallas_src>
import functools

import numpy as np

import jax
import jax.numpy as jnp
from jax.experimental import pallas as pl
from jax.experimental.pallas import tpu as pltpu


def _loss_edge_kernel(verts_ref, idx_ref, out_ref, dp_acc, dq_acc, *,
                      num_edges, fused, vertex_resident):
    e = pl.program_id(0)          # edge-tile index (parallel)
    n = pl.program_id(1)          # vertex-tile index (reduction axis)
    n_n = pl.num_programs(1)

    t_n = verts_ref.shape[-1]     # vertex tile size (lane dim of verts)
    t_e = idx_ref.shape[-1]       # edge tile size (lane dim of edges)

    @pl.when(n == 0)
    def _():
        dp_acc[...] = jnp.zeros_like(dp_acc)
        if not fused:
            dq_acc[...] = jnp.zeros_like(dq_acc)

    # Vertex tile [8, t_n]: pred xyz on sublanes 0-2, gt xyz on sublanes 4-6.
    if vertex_resident:
        verts = verts_ref[n]      # whole slab is VMEM-resident; dynamic tile pick
    else:
        verts = verts_ref[0]      # streamed (1, 8, t_n) block

    # Grid-invariant iota; the tile offset lives on the cheap [1, t_e] rows.
    row_idx = jax.lax.broadcasted_iota(jnp.int32, (t_n, t_e), 0)
    base = n * t_n

    idx = idx_ref[...]            # [4, t_e] int32; rows = i0, i1, g0, g1
    i0 = idx[0:1, :] - base
    i1 = idx[1:2, :] - base

    prec = jax.lax.Precision.HIGHEST   # exact f32 gather (indicators are +-1/0)

    if fused:
        # Same connectivity for pred and gt: one indicator, one matmul.
        s = ((row_idx == i0).astype(jnp.float32)
             - (row_idx == i1).astype(jnp.float32))
        dp_acc[...] += jnp.dot(verts, s,
                               preferred_element_type=jnp.float32,
                               precision=prec)
    else:
        g0 = idx[2:3, :] - base
        g1 = idx[3:4, :] - base
        s_id = ((row_idx == i0).astype(jnp.float32)
                - (row_idx == i1).astype(jnp.float32))
        s_gt = ((row_idx == g0).astype(jnp.float32)
                - (row_idx == g1).astype(jnp.float32))
        dp_acc[...] += jnp.dot(verts, s_id,
                               preferred_element_type=jnp.float32,
                               precision=prec)
        dq_acc[...] += jnp.dot(verts, s_gt,
                               preferred_element_type=jnp.float32,
                               precision=prec)

    @pl.when(n == n_n - 1)
    def _():
        dp = dp_acc[...]
        dq = dp if fused else dq_acc[...]
        sp = dp * dp
        sg = dq * dq
        elp = jnp.sum(sp[0:4, :], axis=0, keepdims=True)   # [1, t_e] pred sq-len
        elg = jnp.sum(sg[4:8, :], axis=0, keepdims=True)   # [1, t_e] gt sq-len
        # Exact reciprocal (approx=True would exceed the 1e-5 tolerance).
        err = jnp.abs(elp * pl.reciprocal(elg) - 1.0)
        # Padded edge lanes have elg == 0 -> NaN; must stay a select (not a mul).
        edge_id = jax.lax.broadcasted_iota(jnp.int32, (1, t_e), 1) + e * t_e
        err = jnp.where(edge_id < num_edges, err, 0.0)
        tile_sum = jnp.sum(err, axis=1, keepdims=True)       # [1, 1]
        out_ref[...] = jnp.broadcast_to(tile_sum, out_ref.shape)


def _round_up(x, m):
    return ((x + m - 1) // m) * m


def loss_edge(pred_v, edge_index_id, gt_v, edge_index_gt, *,
              edge_tile=1024, vert_tile=1024, same_edges=None,
              resident_vertex_bytes=4 * 1024 * 1024):
    """Pallas implementation of LossEdge.forward."""
    if pred_v.ndim > 2:
        pred_v = pred_v.reshape(-1, 3)
        gt_v = gt_v.reshape(-1, 3)
    pred_v = pred_v.astype(jnp.float32)
    gt_v = gt_v.astype(jnp.float32)

    n_vert = pred_v.shape[0]
    n_edge = int(edge_index_id.shape[1])

    # Detect the common "same connectivity" mesh case for the fused fast path.
    if same_edges is None:
        if edge_index_id is edge_index_gt:
            same_edges = True
        else:
            try:
                same_edges = bool(np.array_equal(np.asarray(edge_index_id),
                                                 np.asarray(edge_index_gt)))
            except Exception:      # tracers under jit -> cannot decide statically
                same_edges = False

    t_e = min(edge_tile, _round_up(n_edge, 128))
    t_n = min(vert_tile, _round_up(n_vert, 128))
    ep = _round_up(n_edge, t_e)
    np_ = _round_up(n_vert, t_n)
    n_e_tiles = ep // t_e
    n_n_tiles = np_ // t_n

    # Combined vertex slab: [8, Np] -> [n_n_tiles, 8, t_n].
    slab = jnp.zeros((8, np_), jnp.float32)
    slab = slab.at[0:3, :n_vert].set(pred_v.T)
    slab = slab.at[4:7, :n_vert].set(gt_v.T)
    verts = slab.reshape(8, n_n_tiles, t_n).transpose(1, 0, 2)

    # Packed indices [4, Ep]; padded edges point at vertex 0 -> zero column.
    idx = jnp.concatenate(
        [edge_index_id.astype(jnp.int32).reshape(2, -1),
         edge_index_gt.astype(jnp.int32).reshape(2, -1)], axis=0)   # [4, E]
    idx = jnp.pad(idx, ((0, 0), (0, ep - n_edge)))                  # [4, Ep]

    vertex_resident = (verts.size * 4) <= resident_vertex_bytes
    if vertex_resident:
        verts_spec = pl.BlockSpec((n_n_tiles, 8, t_n), lambda e, n: (0, 0, 0))
    else:
        verts_spec = pl.BlockSpec((1, 8, t_n), lambda e, n: (n, 0, 0))

    kernel = functools.partial(_loss_edge_kernel, num_edges=n_edge,
                               fused=same_edges,
                               vertex_resident=vertex_resident)

    partial_sums = pl.pallas_call(
        kernel,
        out_shape=jax.ShapeDtypeStruct((1, 128 * n_e_tiles), jnp.float32),
        grid_spec=pltpu.PrefetchScalarGridSpec(
            num_scalar_prefetch=0,
            grid=(n_e_tiles, n_n_tiles),
            in_specs=[
                verts_spec,                                    # vertex slab
                pl.BlockSpec((4, t_e), lambda e, n: (0, e)),   # packed indices
            ],
            out_specs=pl.BlockSpec((1, 128), lambda e, n: (0, e)),
            scratch_shapes=[
                pltpu.VMEM((8, t_e), jnp.float32),   # dp (or fused dp/dq) acc
                pltpu.VMEM((8, t_e), jnp.float32),   # dq accumulator (unfused)
            ],
        ),
        compiler_params=pltpu.CompilerParams(
            dimension_semantics=("parallel", "arbitrary"),
            vmem_limit_bytes=48 * 1024 * 1024,   # fits v7x's 64 MiB VMEM
        ),
    )(verts, idx)

    # Per-edge-tile partial sums live on lanes 0, 128, 256, ...
    per_tile = partial_sums[0, ::128]
    return jnp.sum(per_tile) / n_edge


def _loss_edge_ref(pred_v, edge_index_id, gt_v, edge_index_gt):
    """Plain-JAX reference mirroring the PyTorch module."""
    if pred_v.ndim > 2:
        pred_v = pred_v.reshape(-1, 3)
        gt_v = gt_v.reshape(-1, 3)
    elp = jnp.sum((pred_v[edge_index_id[0]] - pred_v[edge_index_id[1]]) ** 2, axis=1)
    elg = jnp.sum((gt_v[edge_index_gt[0]] - gt_v[edge_index_gt[1]]) ** 2, axis=1)
    return jnp.mean(jnp.abs(elp / elg - 1.0))


if __name__ == "__main__":
    key = jax.random.PRNGKey(0)
    k1, k2, k3, k4, k5, k6 = jax.random.split(key, 6)

    B, V, E = 2, 32, 16
    N = B * V  # 64 flattened vertices

    # Batched vertex tensors (dim > 2 path in forward -> reshape to [-1, 3]).
    pred_v = jax.random.normal(k1, (B, V, 3), dtype=jnp.float32)
    gt_v = pred_v + 0.1 * jax.random.normal(k2, (B, V, 3), dtype=jnp.float32)

    # Edge index lists [2, E]; ensure endpoints differ so gt lengths are nonzero.
    e0_id = jax.random.randint(k3, (E,), 0, N, dtype=jnp.int32)
    off_id = jax.random.randint(k4, (E,), 1, N, dtype=jnp.int32)
    edge_index_id = jnp.stack([e0_id, (e0_id + off_id) % N], axis=0)

    e0_gt = jax.random.randint(k5, (E,), 0, N, dtype=jnp.int32)
    off_gt = jax.random.randint(k6, (E,), 1, N, dtype=jnp.int32)
    edge_index_gt = jnp.stack([e0_gt, (e0_gt + off_gt) % N], axis=0)

    # General path: pred and gt use different connectivity.
    loss = loss_edge(pred_v, edge_index_id, gt_v, edge_index_gt)
    jax.block_until_ready(loss)
    ref = _loss_edge_ref(pred_v, edge_index_id, gt_v, edge_index_gt)
    assert jnp.allclose(loss, ref, rtol=1e-5, atol=1e-5), (loss, ref)

    # Fused fast path: identical connectivity (common mesh case).
    loss_f = loss_edge(pred_v, edge_index_id, gt_v, edge_index_id)
    jax.block_until_ready(loss_f)
    ref_f = _loss_edge_ref(pred_v, edge_index_id, gt_v, edge_index_id)
    assert jnp.allclose(loss_f, ref_f, rtol=1e-5, atol=1e-5), (loss_f, ref_f)

    print("KERNEL_OK")
</pallas_src>

<mosaic_0001>
module attributes {stable_mosaic.version = 11 : i64} {
  func.func @_loss_edge_kernel(%arg0: i32, %arg1: i32, %arg2: memref<1x8x128xf32, #tpu.memory_space<vmem>>, %arg3: memref<4x128xi32, #tpu.memory_space<vmem>>, %arg4: memref<1x128xf32, #tpu.memory_space<vmem>>, %arg5: memref<8x128xf32, #tpu.memory_space<vmem>>, %arg6: memref<8x128xf32, #tpu.memory_space<vmem>>) attributes {dimension_semantics = [#tpu.dimension_semantics<parallel>, #tpu.dimension_semantics<arbitrary>], iteration_bounds = array<i64: 1, 1>, scalar_prefetch = 0 : i64, scratch_operands = 2 : i64, tpu.core_type = #tpu.core_type<tc>, window_params = [{pipeline_mode = #tpu.pipeline_mode<synchronous>, transform_indices = @transform_0, window_bounds = array<i64: 1, 8, 128>}, {transform_indices = @transform_1, window_bounds = array<i64: 4, 128>}, {transform_indices = @transform_2, window_bounds = array<i64: 1, 128>}]} {
    %c0_i32 = arith.constant 0 : i32
    %0 = arith.cmpi eq, %arg1, %c0_i32 : i32
    %1 = arith.extui %0 : i1 to i32
    %c0_i32_0 = arith.constant 0 : i32
    %2 = arith.cmpi ne, %1, %c0_i32_0 : i32
    scf.if %2 {
      %cst_15 = arith.constant 0.000000e+00 : f32
      %50 = vector.broadcast %cst_15 : f32 to vector<8x128xf32>
      %c0_16 = arith.constant 0 : index
      %c0_17 = arith.constant 0 : index
      %51 = vector.load %arg5[%c0_16, %c0_17] : memref<8x128xf32, #tpu.memory_space<vmem>>, vector<8x128xf32>
      tpu.vector_store %arg5[%c0_16, %c0_17], %50 {strides = array<i32>} : memref<8x128xf32, #tpu.memory_space<vmem>>, vector<8x128xf32>,
      %cst_18 = arith.constant 0.000000e+00 : f32
      %52 = vector.broadcast %cst_18 : f32 to vector<8x128xf32>
      %c0_19 = arith.constant 0 : index
      %c0_20 = arith.constant 0 : index
      %53 = vector.load %arg6[%c0_19, %c0_20] : memref<8x128xf32, #tpu.memory_space<vmem>>, vector<8x128xf32>
      tpu.vector_store %arg6[%c0_19, %c0_20], %52 {strides = array<i32>} : memref<8x128xf32, #tpu.memory_space<vmem>>, vector<8x128xf32>,
    } else {
    }
    %3 = arith.index_cast %arg1 : i32 to index
    %c0 = arith.constant 0 : index
    %c0_1 = arith.constant 0 : index
    %4 = vector.load %arg2[%3, %c0, %c0_1] : memref<1x8x128xf32, #tpu.memory_space<vmem>>, vector<1x8x128xf32>
    %5 = vector.shape_cast %4 : vector<1x8x128xf32> to vector<8x128xf32>
    %6 = tpu.iota {dimensions = array<i32: 0>} : vector<128x128xi32>
    %c128_i32 = arith.constant 128 : i32
    %7 = arith.muli %arg1, %c128_i32 : i32
    %c0_2 = arith.constant 0 : index
    %c0_3 = arith.constant 0 : index
    %8 = vector.load %arg3[%c0_2, %c0_3] : memref<4x128xi32, #tpu.memory_space<vmem>>, vector<4x128xi32>
    %9 = vector.extract_strided_slice %8 {offsets = [0, 0], sizes = [1, 128], strides = [1, 1]} : vector<4x128xi32> to vector<1x128xi32>
    %10 = vector.broadcast %7 : i32 to vector<1x128xi32>
    %11 = arith.subi %9, %10 : vector<1x128xi32>
    %12 = vector.extract_strided_slice %8 {offsets = [1, 0], sizes = [1, 128], strides = [1, 1]} : vector<4x128xi32> to vector<1x128xi32>
    %13 = vector.broadcast %7 : i32 to vector<1x128xi32>
    %14 = arith.subi %12, %13 : vector<1x128xi32>
    %15 = vector.extract_strided_slice %8 {offsets = [2, 0], sizes = [1, 128], strides = [1, 1]} : vector<4x128xi32> to vector<1x128xi32>
    %16 = vector.broadcast %7 : i32 to vector<1x128xi32>
    %17 = arith.subi %15, %16 : vector<1x128xi32>
    %18 = vector.extract_strided_slice %8 {offsets = [3, 0], sizes = [1, 128], strides = [1, 1]} : vector<4x128xi32> to vector<1x128xi32>
    %19 = vector.broadcast %7 : i32 to vector<1x128xi32>
    %20 = arith.subi %18, %19 : vector<1x128xi32>
    %21 = vector.broadcast %11 : vector<1x128xi32> to vector<128x128xi32>
    %22 = arith.cmpi eq, %6, %21 : vector<128x128xi32>
    %23 = arith.extui %22 : vector<128x128xi1> to vector<128x128xi32>
    %24 = arith.sitofp %23 : vector<128x128xi32> to vector<128x128xf32>
    %25 = vector.broadcast %14 : vector<1x128xi32> to vector<128x128xi32>
    %26 = arith.cmpi eq, %6, %25 : vector<128x128xi32>
    %27 = arith.extui %26 : vector<128x128xi1> to vector<128x128xi32>
    %28 = arith.sitofp %27 : vector<128x128xi32> to vector<128x128xf32>
    %29 = arith.subf %24, %28 : vector<128x128xf32>
    %30 = vector.broadcast %17 : vector<1x128xi32> to vector<128x128xi32>
    %31 = arith.cmpi eq, %6, %30 : vector<128x128xi32>
    %32 = arith.extui %31 : vector<128x128xi1> to vector<128x128xi32>
    %33 = arith.sitofp %32 : vector<128x128xi32> to vector<128x128xf32>
    %34 = vector.broadcast %20 : vector<1x128xi32> to vector<128x128xi32>
    %35 = arith.cmpi eq, %6, %34 : vector<128x128xi32>
    %36 = arith.extui %35 : vector<128x128xi1> to vector<128x128xi32>
    %37 = arith.sitofp %36 : vector<128x128xi32> to vector<128x128xf32>
    %38 = arith.subf %33, %37 : vector<128x128xf32>
    %c0_4 = arith.constant 0 : index
    %c0_5 = arith.constant 0 : index
    %39 = vector.load %arg5[%c0_4, %c0_5] : memref<8x128xf32, #tpu.memory_space<vmem>>, vector<8x128xf32>
    %cst = arith.constant dense<0.000000e+00> : vector<8x128xf32>
    %40 = tpu.matmul %5, %29, %cst {dimension_numbers = #tpu.dot_dimension_numbers<[1], [0], [0], [1], [0, 0, 1, 1], [], []>, precision = #tpu.contract_precision<fp32>} : vector<8x128xf32>, vector<128x128xf32>, vector<8x128xf32> -> vector<8x128xf32>
    %41 = arith.addf %39, %40 : vector<8x128xf32>
    %c0_6 = arith.constant 0 : index
    %c0_7 = arith.constant 0 : index
    %42 = vector.load %arg5[%c0_6, %c0_7] : memref<8x128xf32, #tpu.memory_space<vmem>>, vector<8x128xf32>
    tpu.vector_store %arg5[%c0_6, %c0_7], %41 {strides = array<i32>} : memref<8x128xf32, #tpu.memory_space<vmem>>, vector<8x128xf32>,
    %c0_8 = arith.constant 0 : index
    %c0_9 = arith.constant 0 : index
    %43 = vector.load %arg6[%c0_8, %c0_9] : memref<8x128xf32, #tpu.memory_space<vmem>>, vector<8x128xf32>
    %cst_10 = arith.constant dense<0.000000e+00> : vector<8x128xf32>
    %44 = tpu.matmul %5, %38, %cst_10 {dimension_numbers = #tpu.dot_dimension_numbers<[1], [0], [0], [1], [0, 0, 1, 1], [], []>, precision = #tpu.contract_precision<fp32>} : vector<8x128xf32>, vector<128x128xf32>, vector<8x128xf32> -> vector<8x128xf32>
    %45 = arith.addf %43, %44 : vector<8x128xf32>
    %c0_11 = arith.constant 0 : index
    %c0_12 = arith.constant 0 : index
    %46 = vector.load %arg6[%c0_11, %c0_12] : memref<8x128xf32, #tpu.memory_space<vmem>>, vector<8x128xf32>
    tpu.vector_store %arg6[%c0_11, %c0_12], %45 {strides = array<i32>} : memref<8x128xf32, #tpu.memory_space<vmem>>, vector<8x128xf32>,
    %c0_i32_13 = arith.constant 0 : i32
    %47 = arith.cmpi eq, %arg1, %c0_i32_13 : i32
    %48 = arith.extui %47 : i1 to i32
    %c0_i32_14 = arith.constant 0 : i32
    %49 = arith.cmpi ne, %48, %c0_i32_14 : i32
    scf.if %49 {
      %c0_15 = arith.constant 0 : index
      %c0_16 = arith.constant 0 : index
      %50 = vector.load %arg5[%c0_15, %c0_16] : memref<8x128xf32, #tpu.memory_space<vmem>>, vector<8x128xf32>
      %c0_17 = arith.constant 0 : index
      %c0_18 = arith.constant 0 : index
      %51 = vector.load %arg6[%c0_17, %c0_18] : memref<8x128xf32, #tpu.memory_space<vmem>>, vector<8x128xf32>
      %52 = arith.mulf %50, %50 : vector<8x128xf32>
      %53 = arith.mulf %51, %51 : vector<8x128xf32>
      %54 = vector.extract_strided_slice %52 {offsets = [0, 0], sizes = [4, 128], strides = [1, 1]} : vector<8x128xf32> to vector<4x128xf32>
      %cst_19 = arith.constant dense<0.000000e+00> : vector<128xf32>
      %55 = vector.multi_reduction <add>, %54, %cst_19 [0] : vector<4x128xf32> to vector<128xf32>
      %56 = vector.shape_cast %55 : vector<128xf32> to vector<1x128xf32>
      %57 = vector.extract_strided_slice %53 {offsets = [4, 0], sizes = [4, 128], strides = [1, 1]} : vector<8x128xf32> to vector<4x128xf32>
      %cst_20 = arith.constant dense<0.000000e+00> : vector<128xf32>
      %58 = vector.multi_reduction <add>, %57, %cst_20 [0] : vector<4x128xf32> to vector<128xf32>
      %59 = vector.shape_cast %58 : vector<128xf32> to vector<1x128xf32>
      %60 = tpu.reciprocal %59 : vector<1x128xf32> -> vector<1x128xf32>
      %61 = arith.mulf %56, %60 : vector<1x128xf32>
      %cst_21 = arith.constant 1.000000e+00 : f32
      %62 = vector.broadcast %cst_21 : f32 to vector<1x128xf32>
      %63 = arith.subf %61, %62 : vector<1x128xf32>
      %64 = math.absf %63 : vector<1x128xf32>
      %65 = tpu.iota {dimensions = array<i32: 1>} : vector<1x128xi32>
      %c128_i32_22 = arith.constant 128 : i32
      %66 = arith.muli %arg0, %c128_i32_22 : i32
      %67 = vector.broadcast %66 : i32 to vector<1x128xi32>
      %68 = arith.addi %65, %67 : vector<1x128xi32>
      %c16_i32 = arith.constant 16 : i32
      %69 = vector.broadcast %c16_i32 : i32 to vector<1x128xi32>
      %70 = arith.cmpi slt, %68, %69 : vector<1x128xi32>
      %cst_23 = arith.constant 0.000000e+00 : f32
      %71 = vector.broadcast %cst_23 : f32 to vector<1x128xf32>
      %72 = arith.select %70, %64, %71 : vector<1x128xi1>, vector<1x128xf32>
      %cst_24 = arith.constant dense<0.000000e+00> : vector<1xf32>
      %73 = vector.multi_reduction <add>, %72, %cst_24 [1] : vector<1x128xf32> to vector<1xf32>
      %74 = vector.shape_cast %73 : vector<1xf32> to vector<1x1xf32>
      %75 = vector.shape_cast %74 : vector<1x1xf32> to vector<1x1xf32>
      %76 = vector.broadcast %75 : vector<1x1xf32> to vector<1x128xf32>
      %c0_25 = arith.constant 0 : index
      %c0_26 = arith.constant 0 : index
      %77 = vector.load %arg4[%c0_25, %c0_26] : memref<1x128xf32, #tpu.memory_space<vmem>>, vector<1x128xf32>
      tpu.vector_store %arg4[%c0_25, %c0_26], %76 {strides = array<i32>} : memref<1x128xf32, #tpu.memory_space<vmem>>, vector<1x128xf32>,
    } else {
    }
    return
  }
  func.func @transform_0(%arg0: i32, %arg1: i32) -> (i32, i32, i32) {
    %c0_i32 = arith.constant 0 : i32
    %c0_i32_0 = arith.constant 0 : i32
    %c0_i32_1 = arith.constant 0 : i32
    %c0_i32_2 = arith.constant 0 : i32
    return %c0_i32, %c0_i32_0, %c0_i32_1 : i32, i32, i32
  }
  func.func @transform_1(%arg0: i32, %arg1: i32) -> (i32, i32) {
    %c0_i32 = arith.constant 0 : i32
    %c0_i32_0 = arith.constant 0 : i32
    return %c0_i32, %arg0 : i32, i32
  }
  func.func @transform_2(%arg0: i32, %arg1: i32) -> (i32, i32) {
    %c0_i32 = arith.constant 0 : i32
    %c0_i32_0 = arith.constant 0 : i32
    return %c0_i32, %arg0 : i32, i32
  }
}

</mosaic_0001>

<bundles_post_ra>
// kernel: tpu_custom_call.1
= control target key start
LH: loop header
LB: loop body
LE: loop exit
PB: predicated region body
PF: predicated region fallthrough
CT: control target
= control target key end

     0   :  { %7 = vsyncpa [#allocation5], 0  ;;  %s3537_s0 = inlined_call_operand.hbm [shape: f32[1,8,128], index: 0, kind: input, shape index: {}]   ;;  %s3538_s1 = inlined_call_operand.hbm [shape: s32[4,128], index: 1, kind: input, shape index: {}]   ;;  %s3539_s2 = inlined_call_operand.hbm [shape: f32[1,128], index: 2, kind: output, shape index: {}]  }
   0x1   :  { %8 = vsyncpa [#allocation8], 0 }
   0x2   :  { %9 = vsyncpa [#allocation6], 0  ;;  %s2726_s9 = smov [#allocation4]   ;;  %s2727_s11 = smov [#allocation7]  }
   0x3   :  { %s16_s10 = sshll.u32 %s2726_s9, 4  ;;  %s26_s12 = sshll.u32 %s2727_s11, 4  ;;  %s17_s10 = int_to_ptr.vmem [resolvable:$true] %s16_s10  ;;  %s27_s12 = int_to_ptr.vmem [resolvable:$true] %s26_s12 }
   0x4   :  { %s2654_s15 = scalar_lea.hbm %s3537_s0, 128 }
   0x5   :  { %p2655_p0 = scmp.ne.s32.totalorder %s3537_s0, %s2654_s15  ;;  %p2658_p1 = scmp.lt.u32.totalorder %s2654_s15, %s3537_s0 }
   0x7   :  { %p2660_p2 = pnand %p2658_p1, %p2655_p0 }
   0x9   :  { %2663 = shalt.err (!%p2660_p2)
}
   0xa   :  { %s2664_s20 = scalar_lea.vmem %s17_s10, 128  ;;  %p2669_p4 = scmp.lt.s32.totalorder %s17_s10, %s17_s10 }
   0xb   :  { %p2665_p3 = scmp.ne.s32.totalorder %s17_s10, %s2664_s20  ;;  %p2670_p5 = scmp.lt.s32.totalorder %s2664_s20, %s2664_s20 }
   0xd   :  { %p2671_p6 = por %p2670_p5, %p2669_p4 }
   0xf   :  { %p2672_p7 = pnand %p2671_p6, %p2665_p3 }
  0x11   :  { %2675 = shalt.err (!%p2672_p7)
}
  0x12   :  { %19 = dma.hbm_to_vmem [thread:$0]  %s3537_s0, 128, %s17_s10, [#allocation5]  }
  0x13   :  { %s2676_s25 = scalar_lea.hbm %s3538_s1, 64 }
  0x14   :  { %p2677_p8 = scmp.ne.s32.totalorder %s3538_s1, %s2676_s25  ;;  %p2680_p9 = scmp.lt.u32.totalorder %s2676_s25, %s3538_s1 }
  0x16   :  { %p2682_p10 = pnand %p2680_p9, %p2677_p8 }
  0x18   :  { %2685 = shalt.err (!%p2682_p10)
}
  0x19   :  { %s2686_s30 = scalar_lea.vmem %s27_s12, 64  ;;  %p2691_p12 = scmp.lt.s32.totalorder %s27_s12, %s27_s12 }
  0x1a   :  { %p2687_p11 = scmp.ne.s32.totalorder %s27_s12, %s2686_s30  ;;  %p2692_p13 = scmp.lt.s32.totalorder %s2686_s30, %s2686_s30 }
  0x1c   :  { %p2693_p0 = por %p2692_p13, %p2691_p12 }
  0x1e   :  { %p2694_p1 = pnand %p2693_p0, %p2687_p11 }
  0x20   :  { %2697 = shalt.err (!%p2694_p1)
}
  0x21   :  { %29 = dma.hbm_to_vmem [thread:$0]  %s3538_s1, 64, %s27_s12, [#allocation8]  }
  0x22   :  { %2720 = dma.done.wait [#allocation5], 128  }
  0x23   :  { %2721 = vsyncadd [#allocation5], 4294967168 }
  0x24   :  { %2722 = dma.done.wait [#allocation8], 64  }
  0x25   :  { %2723 = vsyncadd [#allocation8], 4294967232  ;;  %v3540_v0 = vlaneseq  ;;  %v3544_v1 = vmov 0.0|0.0   ;;  %vm2729_vm0 = vmmov 0   ;;  %v3541_v3 = vmov 0.0   ;;  %v2808_v25 = vld [vmem:[#allocation4] sm:$0xff] }
  0x26   :  { %2338 = vmatprep.subr.bf16.mxu0 %v3544_v1  ;;  %2482 = vmatprep.subr.bf16.mxu1 %v3544_v1  ;;  %v63_v16 = vld [vmem:[#allocation7] sm:$0xf]  ;;  %v2817_v29 = vand.u32 4294901760, %v2808_v25  ;;  %s2731_s1 = smov [#allocation9]  }
  0x27   :  { %v46_v2 = vshrl.u32 %v3540_v0, 7  ;;  %1950 = vmatprep.mubr.msk.f32.mxu0 %vm2729_vm0, %v3541_v3  ;;  %2160 = vmatprep.mubr.msk.f32.mxu1 %vm2729_vm0, %v3541_v3  ;;  %s1639_s4 = sshll.u32 %s2731_s1, 4  ;;  %s1640_s4 = int_to_ptr.vmem [resolvable:$true] %s1639_s4 }
  0x28   :  { %s2698_s5 = scalar_lea.vmem %s1640_s4, 16  ;;  %s2702_s6 = scalar_lea.vmem %s1640_s4, 32 }
  0x29   :  { %v68_v4 = vsub.s32 0, %v46_v2  ;;  %v120_v5 = vsub.s32 1, %v46_v2  ;;  %v188_v6 = vsub.s32 2, %v46_v2  ;;  %v240_v7 = vsub.s32 3, %v46_v2  ;;  %p2699_p2 = scmp.ne.s32.totalorder %s1640_s4, %s2698_s5  ;;  %p2703_p3 = scmp.lt.s32.totalorder %s1640_s4, %s1640_s4 }
  0x2a   :  { %v47_v8 = vadd.s32 8, %v46_v2  ;;  %v2778_v9 = vadd.s32 16, %v46_v2  ;;  %v2780_v10 = vadd.s32 24, %v46_v2  ;;  %v2782_v11 = vadd.s32 32, %v46_v2  ;;  %p2704_p4 = scmp.lt.s32.totalorder %s2702_s6, %s2698_s5 }
  0x2b   :  { %v2784_v12 = vadd.s32 40, %v46_v2  ;;  %v2786_v13 = vadd.s32 48, %v46_v2  ;;  %v2788_v14 = vadd.s32 56, %v46_v2  ;;  %v2790_v15 = vadd.s32 64, %v46_v2 }
  0x2c   :  { %v2792_v17 = vadd.s32 72, %v46_v2  ;;  %v2794_v18 = vadd.s32 80, %v46_v2  ;;  %v2796_v19 = vadd.s32 88, %v46_v2  ;;  %v2798_v20 = vadd.s32 96, %v46_v2  ;;  %p2705_p5 = por %p2704_p4, %p2703_p3 }
  0x2d   :  { %v2800_v21 = vrot.slane %v63_v16, %v68_v4  ;;  %v2802_v22 = vrot.slane %v63_v16, %v120_v5  ;;  %v2804_v23 = vrot.slane %v63_v16, %v188_v6  ;;  %v2806_v24 = vrot.slane %v63_v16, %v240_v7 }
  0x2e   :  { %v2810_v26 = vadd.s32 104, %v46_v2  ;;  %v2812_v27 = vadd.s32 112, %v46_v2  ;;  %v2814_v28 = vadd.s32 120, %v46_v2  ;;  %p2706_p6 = pnand %p2705_p5, %p2699_p2 }
  0x2f   :  { %vm70_vm1 = vcmp.eq.s32.totalorder %v46_v2, %v2800_v21  ;;  %vm71_vm2 = vcmp.eq.s32.totalorder %v47_v8, %v2800_v21  ;;  %vm122_vm3 = vcmp.eq.s32.totalorder %v46_v2, %v2802_v22  ;;  %vm123_vm4 = vcmp.eq.s32.totalorder %v47_v8, %v2802_v22 }
  0x30   :  { %v1649_v30 = vsel %vm70_vm1, 1.0, %v3541_v3  ;;  %v1650_v31 = vsel %vm71_vm2, 1.0, %v3541_v3  ;;  %v1665_v32 = vsel %vm122_vm3, 1.0, %v3541_v3  ;;  %v1666_v33 = vsel %vm123_vm4, 1.0, %v3541_v3 }
  0x31   :  { %v170_v34 = vsub.f32 %v1649_v30, %v1665_v32  ;;  %v171_v35 = vsub.f32 %v1650_v31, %v1666_v33  ;;  %vm190_vm5 = vcmp.eq.s32.totalorder %v46_v2, %v2804_v23  ;;  %vm191_vm6 = vcmp.eq.s32.totalorder %v47_v8, %v2804_v23 }
  0x32   :  { %v1681_v36 = vsel %vm190_vm5, 1.0, %v3541_v3  ;;  %v1682_v37 = vsel %vm191_vm6, 1.0, %v3541_v3  ;;  %vm242_vm7 = vcmp.eq.s32.totalorder %v46_v2, %v2806_v24  ;;  %vm243_vm8 = vcmp.eq.s32.totalorder %v47_v8, %v2806_v24 }
  0x33   :  { %v308_v38 = vand.u32 4294901760, %v170_v34  ;;  %v311_v39 = vand.u32 4294901760, %v171_v35  ;;  %v1697_v40 = vsel %vm242_vm7, 1.0, %v3541_v3  ;;  %v1698_v41 = vsel %vm243_vm8, 1.0, %v3541_v3 }
  0x34   :  { %v290_v42 = vsub.f32 %v1681_v36, %v1697_v40  ;;  %v291_v43 = vsub.f32 %v1682_v37, %v1698_v41  ;;  %vm72_vm9 = vcmp.eq.s32.totalorder %v2778_v9, %v2800_v21  ;;  %vm73_vm10 = vcmp.eq.s32.totalorder %v2780_v10, %v2800_v21 }
  0x35   :  { %v2839_v44 = vpack.c.bf16 %v311_v39, %v308_v38  ;;  %v2841_v45 = vsub.f32 %v170_v34, %v308_v38  ;;  %v2843_v46 = vsub.f32 %v171_v35, %v311_v39  ;;  %v1651_v47 = vsel %vm72_vm9, 1.0, %v3541_v3 }
  0x36   :  { %v952_v48 = vand.u32 4294901760, %v290_v42  ;;  %v955_v49 = vand.u32 4294901760, %v291_v43  ;;  %v1652_v50 = vsel %vm73_vm10, 1.0, %v3541_v3  ;;  %vm124_vm11 = vcmp.eq.s32.totalorder %v2778_v9, %v2802_v22 }
  0x37   :  { %2340 = vmatpush3.bf16.msra.mxu0 %v2839_v44  ;;  %vm125_vm12 = vcmp.eq.s32.totalorder %v2780_v10, %v2802_v22  ;;  %v1667_v51 = vsel %vm124_vm11, 1.0, %v3541_v3  ;;  %vm192_vm13 = vcmp.eq.s32.totalorder %v2778_v9, %v2804_v23  ;;  %vm193_vm14 = vcmp.eq.s32.totalorder %v2780_v10, %v2804_v23 }
  0x38   :  { %v2857_v52 = vpack.c.bf16 %v955_v49, %v952_v48  ;;  %v2859_v53 = vsub.f32 %v290_v42, %v952_v48  ;;  %v2861_v54 = vsub.f32 %v291_v43, %v955_v49  ;;  %2341 = vmatprep.subr.bf16.mxu0 %v3544_v1  ;;  %v1668_v55 = vsel %vm125_vm12, 1.0, %v3541_v3 }
  0x39   :  { %v172_v56 = vsub.f32 %v1651_v47, %v1667_v51  ;;  %v173_v57 = vsub.f32 %v1652_v50, %v1668_v55  ;;  %v1683_v58 = vsel %vm192_vm13, 1.0, %v3541_v3  ;;  %v1684_v59 = vsel %vm193_vm14, 1.0, %v3541_v3 }
  0x3a   :  { %2484 = vmatpush3.bf16.msra.mxu1 %v2857_v52  ;;  %vm244_vm15 = vcmp.eq.s32.totalorder %v2778_v9, %v2806_v24  ;;  %vm245_vm1 = vcmp.eq.s32.totalorder %v2780_v10, %v2806_v24  ;;  %vm74_vm2 = vcmp.eq.s32.totalorder %v2782_v11, %v2800_v21  ;;  %vm75_vm3 = vcmp.eq.s32.totalorder %v2784_v12, %v2800_v21 }
  0x3b   :  { %2485 = vmatprep.subr.bf16.mxu1 %v3544_v1  ;;  %v314_v60 = vand.u32 4294901760, %v172_v56  ;;  %v317_v61 = vand.u32 4294901760, %v173_v57  ;;  %v1699_v62 = vsel %vm244_vm15, 1.0, %v3541_v3  ;;  %v1700_v63 = vsel %vm245_vm1, 1.0, %v3541_v3 }
  0x3c   :  { %v292_v2 = vsub.f32 %v1683_v58, %v1699_v62  ;;  %v293_v4 = vsub.f32 %v1684_v59, %v1700_v63  ;;  %v1653_v5 = vsel %vm74_vm2, 1.0, %v3541_v3  ;;  %v1654_v6 = vsel %vm75_vm3, 1.0, %v3541_v3 }
  0x3d   :  { %v2881_v7 = vpack.c.bf16 %v317_v61, %v314_v60  ;;  %v2883_v8 = vsub.f32 %v172_v56, %v314_v60  ;;  %v2885_v9 = vsub.f32 %v173_v57, %v317_v61  ;;  %vm126_vm4 = vcmp.eq.s32.totalorder %v2782_v11, %v2802_v22 }
  0x3e   :  { %v958_v10 = vand.u32 4294901760, %v292_v2  ;;  %v961_v16 = vand.u32 4294901760, %v293_v4  ;;  %vm127_vm5 = vcmp.eq.s32.totalorder %v2784_v12, %v2802_v22  ;;  %v1669_v30 = vsel %vm126_vm4, 1.0, %v3541_v3 }
  0x3f   :  { %3600 = vst [vmem:[#allocation13_spill] sm:$0xff] %v2881_v7  ;;  %2343 = vmatpush3.bf16.msra.mxu0 %v2881_v7  ;;  %v1670_v31 = vsel %vm127_vm5, 1.0, %v3541_v3  ;;  %v174_v32 = vsub.f32 %v1653_v5, %v1669_v30  ;;  %vm194_vm6 = vcmp.eq.s32.totalorder %v2782_v11, %v2804_v23  ;;  %vm195_vm7 = vcmp.eq.s32.totalorder %v2784_v12, %v2804_v23 }
  0x40   :  { %v2898_v33 = vpack.c.bf16 %v961_v16, %v958_v10  ;;  %v2900_v34 = vsub.f32 %v292_v2, %v958_v10  ;;  %v2902_v35 = vsub.f32 %v293_v4, %v961_v16  ;;  %2344 = vmatprep.subr.bf16.mxu0 %v3544_v1  ;;  %v175_v36 = vsub.f32 %v1654_v6, %v1670_v31 }
  0x41   :  { %v320_v37 = vand.u32 4294901760, %v174_v32  ;;  %v1685_v38 = vsel %vm194_vm6, 1.0, %v3541_v3  ;;  %v1686_v39 = vsel %vm195_vm7, 1.0, %v3541_v3  ;;  %vm246_vm8 = vcmp.eq.s32.totalorder %v2782_v11, %v2806_v24 }
  0x42   :  { %3601 = vst [vmem:[#allocation14_spill] sm:$0xff] %v2898_v33  ;;  %2487 = vmatpush3.bf16.msra.mxu1 %v2898_v33  ;;  %v323_v40 = vand.u32 4294901760, %v175_v36  ;;  %vm247_vm9 = vcmp.eq.s32.totalorder %v2784_v12, %v2806_v24  ;;  %v1701_v41 = vsel %vm246_vm8, 1.0, %v3541_v3  ;;  %vm76_vm10 = vcmp.eq.s32.totalorder %v2786_v13, %v2800_v21 }
  0x43   :  { %2488 = vmatprep.subr.bf16.mxu1 %v3544_v1  ;;  %v2916_v42 = vsub.f32 %v174_v32, %v320_v37  ;;  %v1702_v43 = vsel %vm247_vm9, 1.0, %v3541_v3  ;;  %v294_v47 = vsub.f32 %v1685_v38, %v1701_v41  ;;  %vm77_vm11 = vcmp.eq.s32.totalorder %v2788_v14, %v2800_v21 }
  0x44   :  { %v2921_v11 = vpack.c.bf16 %v323_v40, %v320_v37  ;;  %v2923_v48 = vsub.f32 %v175_v36, %v323_v40  ;;  %v295_v12 = vsub.f32 %v1686_v39, %v1702_v43  ;;  %v1655_v49 = vsel %vm76_vm10, 1.0, %v3541_v3 }
  0x45   :  { %v964_v50 = vand.u32 4294901760, %v294_v47  ;;  %v1656_v51 = vsel %vm77_vm11, 1.0, %v3541_v3  ;;  %vm128_vm12 = vcmp.eq.s32.totalorder %v2786_v13, %v2802_v22  ;;  %vm129_vm13 = vcmp.eq.s32.totalorder %v2788_v14, %v2802_v22 }
  0x46   :  { %3602 = vst [vmem:[#allocation15_spill] sm:$0xff] %v2921_v11  ;;  %2346 = vmatpush3.bf16.msra.mxu0 %v2921_v11  ;;  %v967_v55 = vand.u32 4294901760, %v295_v12  ;;  %v1671_v56 = vsel %vm128_vm12, 1.0, %v3541_v3  ;;  %v1672_v57 = vsel %vm129_vm13, 1.0, %v3541_v3  ;;  %vm196_vm14 = vcmp.eq.s32.totalorder %v2786_v13, %v2804_v23 }
  0x47   :  { %v2936_v58 = vsub.f32 %v294_v47, %v964_v50  ;;  %2347 = vmatprep.subr.bf16.mxu0 %v3544_v1  ;;  %v176_v59 = vsub.f32 %v1655_v49, %v1671_v56  ;;  %v177_v60 = vsub.f32 %v1656_v51, %v1672_v57  ;;  %vm197_vm15 = vcmp.eq.s32.totalorder %v2788_v14, %v2804_v23 }
  0x48   :  { %v2941_v61 = vpack.c.bf16 %v967_v55, %v964_v50  ;;  %v2943_v62 = vsub.f32 %v295_v12, %v967_v55  ;;  %v1687_v63 = vsel %vm196_vm14, 1.0, %v3541_v3  ;;  %v1688_v2 = vsel %vm197_vm15, 1.0, %v3541_v3 }
  0x49   :  { %v326_v4 = vand.u32 4294901760, %v176_v59  ;;  %v329_v5 = vand.u32 4294901760, %v177_v60  ;;  %vm248_vm1 = vcmp.eq.s32.totalorder %v2786_v13, %v2806_v24  ;;  %vm249_vm2 = vcmp.eq.s32.totalorder %v2788_v14, %v2806_v24 }
  0x4a   :  { %3603 = vst [vmem:[#allocation16_spill] sm:$0xff] %v2941_v61  ;;  %2490 = vmatpush3.bf16.msra.mxu1 %v2941_v61  ;;  %v1703_v6 = vsel %vm248_vm1, 1.0, %v3541_v3  ;;  %v1704_v10 = vsel %vm249_vm2, 1.0, %v3541_v3  ;;  %vm78_vm3 = vcmp.eq.s32.totalorder %v2790_v15, %v2800_v21  ;;  %vm79_vm4 = vcmp.eq.s32.totalorder %v2792_v17, %v2800_v21 }
  0x4b   :  { %2491 = vmatprep.subr.bf16.mxu1 %v3544_v1  ;;  %v2959_v16 = vpack.c.bf16 %v329_v5, %v326_v4  ;;  %v2961_v13 = vsub.f32 %v176_v59, %v326_v4  ;;  %v2963_v30 = vsub.f32 %v177_v60, %v329_v5  ;;  %v296_v14 = vsub.f32 %v1687_v63, %v1703_v6 }
  0x4c   :  { %v297_v31 = vsub.f32 %v1688_v2, %v1704_v10  ;;  %v1657_v32 = vsel %vm78_vm3, 1.0, %v3541_v3  ;;  %v1658_v36 = vsel %vm79_vm4, 1.0, %v3541_v3  ;;  %vm130_vm5 = vcmp.eq.s32.totalorder %v2790_v15, %v2802_v22 }
  0x4d   :  { %3604 = vst [vmem:[#allocation17_spill] sm:$0xff] %v2959_v16  ;;  %2349 = vmatpush3.bf16.msra.mxu0 %v2959_v16  ;;  %v970_v37 = vand.u32 4294901760, %v296_v14  ;;  %vm131_vm6 = vcmp.eq.s32.totalorder %v2792_v17, %v2802_v22  ;;  %v1673_v38 = vsel %vm130_vm5, 1.0, %v3541_v3  ;;  %vm198_vm7 = vcmp.eq.s32.totalorder %v2790_v15, %v2804_v23 }
  0x4e   :  { %v973_v39 = vand.u32 4294901760, %v297_v31  ;;  %2350 = vmatprep.subr.bf16.mxu0 %v3544_v1  ;;  %v1674_v40 = vsel %vm131_vm6, 1.0, %v3541_v3  ;;  %v178_v41 = vsub.f32 %v1657_v32, %v1673_v38  ;;  %vm199_vm8 = vcmp.eq.s32.totalorder %v2792_v17, %v2804_v23 }
  0x4f   :  { %v2979_v43 = vsub.f32 %v296_v14, %v970_v37  ;;  %v179_v47 = vsub.f32 %v1658_v36, %v1674_v40  ;;  %v1689_v12 = vsel %vm198_vm7, 1.0, %v3541_v3  ;;  %v1690_v49 = vsel %vm199_vm8, 1.0, %v3541_v3 }
  0x50   :  { %v2983_v50 = vpack.c.bf16 %v973_v39, %v970_v37  ;;  %v2985_v51 = vsub.f32 %v297_v31, %v973_v39  ;;  %v332_v55 = vand.u32 4294901760, %v178_v41  ;;  %vm250_vm9 = vcmp.eq.s32.totalorder %v2790_v15, %v2806_v24 }
  0x51   :  { %v335_v56 = vand.u32 4294901760, %v179_v47  ;;  %vm251_vm10 = vcmp.eq.s32.totalorder %v2792_v17, %v2806_v24  ;;  %v1705_v57 = vsel %vm250_vm9, 1.0, %v3541_v3  ;;  %vm80_vm11 = vcmp.eq.s32.totalorder %v2794_v18, %v2800_v21 }
  0x52   :  { %3605 = vst [vmem:[#allocation18_spill] sm:$0xff] %v2983_v50  ;;  %2493 = vmatpush3.bf16.msra.mxu1 %v2983_v50  ;;  %v2995_v59 = vsub.f32 %v178_v41, %v332_v55  ;;  %v1706_v60 = vsel %vm251_vm10, 1.0, %v3541_v3  ;;  %v298_v63 = vsub.f32 %v1689_v12, %v1705_v57  ;;  %vm81_vm12 = vcmp.eq.s32.totalorder %v2796_v19, %v2800_v21 }
  0x53   :  { %2494 = vmatprep.subr.bf16.mxu1 %v3544_v1  ;;  %v3001_v15 = vpack.c.bf16 %v335_v56, %v332_v55  ;;  %v3003_v17 = vsub.f32 %v179_v47, %v335_v56  ;;  %v299_v2 = vsub.f32 %v1690_v49, %v1706_v60  ;;  %v1659_v4 = vsel %vm80_vm11, 1.0, %v3541_v3 }
  0x54   :  { %v976_v5 = vand.u32 4294901760, %v298_v63  ;;  %v1660_v6 = vsel %vm81_vm12, 1.0, %v3541_v3  ;;  %vm132_vm13 = vcmp.eq.s32.totalorder %v2794_v18, %v2802_v22  ;;  %vm133_vm14 = vcmp.eq.s32.totalorder %v2796_v19, %v2802_v22 }
  0x55   :  { %3606 = vst [vmem:[#allocation19_spill] sm:$0xff] %v3001_v15  ;;  %2352 = vmatpush3.bf16.msra.mxu0 %v3001_v15  ;;  %v979_v10 = vand.u32 4294901760, %v299_v2  ;;  %v1675_v14 = vsel %vm132_vm13, 1.0, %v3541_v3  ;;  %v1676_v31 = vsel %vm133_vm14, 1.0, %v3541_v3  ;;  %vm200_vm15 = vcmp.eq.s32.totalorder %v2794_v18, %v2804_v23 }
  0x56   :  { %v3016_v32 = vsub.f32 %v298_v63, %v976_v5  ;;  %2353 = vmatprep.subr.bf16.mxu0 %v3544_v1  ;;  %v180_v36 = vsub.f32 %v1659_v4, %v1675_v14  ;;  %v181_v37 = vsub.f32 %v1660_v6, %v1676_v31  ;;  %vm201_vm1 = vcmp.eq.s32.totalorder %v2796_v19, %v2804_v23 }
  0x57   :  { %v3021_v38 = vpack.c.bf16 %v979_v10, %v976_v5  ;;  %v3023_v39 = vsub.f32 %v299_v2, %v979_v10  ;;  %v1691_v40 = vsel %vm200_vm15, 1.0, %v3541_v3  ;;  %v1692_v41 = vsel %vm201_vm1, 1.0, %v3541_v3 }
  0x58   :  { %v338_v47 = vand.u32 4294901760, %v180_v36  ;;  %v341_v12 = vand.u32 4294901760, %v181_v37  ;;  %vm252_vm2 = vcmp.eq.s32.totalorder %v2794_v18, %v2806_v24  ;;  %vm253_vm3 = vcmp.eq.s32.totalorder %v2796_v19, %v2806_v24 }
  0x59   :  { %3607 = vst [vmem:[#allocation20_spill] sm:$0xff] %v3021_v38  ;;  %2496 = vmatpush3.bf16.msra.mxu1 %v3021_v38  ;;  %v1707_v49 = vsel %vm252_vm2, 1.0, %v3541_v3  ;;  %v1708_v55 = vsel %vm253_vm3, 1.0, %v3541_v3  ;;  %vm82_vm4 = vcmp.eq.s32.totalorder %v2798_v20, %v2800_v21  ;;  %vm83_vm5 = vcmp.eq.s32.totalorder %v2810_v26, %v2800_v21 }
  0x5a   :  { %2497 = vmatprep.subr.bf16.mxu1 %v3544_v1  ;;  %v3039_v56 = vpack.c.bf16 %v341_v12, %v338_v47  ;;  %v3041_v18 = vsub.f32 %v180_v36, %v338_v47  ;;  %v3043_v57 = vsub.f32 %v181_v37, %v341_v12  ;;  %v300_v19 = vsub.f32 %v1691_v40, %v1707_v49 }
  0x5b   :  { %v301_v60 = vsub.f32 %v1692_v41, %v1708_v55  ;;  %v1661_v63 = vsel %vm82_vm4, 1.0, %v3541_v3  ;;  %v1662_v2 = vsel %vm83_vm5, 1.0, %v3541_v3  ;;  %vm134_vm6 = vcmp.eq.s32.totalorder %v2798_v20, %v2802_v22 }
  0x5c   :  { %3608 = vst [vmem:[#allocation21_spill] sm:$0xff] %v3039_v56  ;;  %2355 = vmatpush3.bf16.msra.mxu0 %v3039_v56  ;;  %v982_v4 = vand.u32 4294901760, %v300_v19  ;;  %vm135_vm7 = vcmp.eq.s32.totalorder %v2810_v26, %v2802_v22  ;;  %v1677_v5 = vsel %vm134_vm6, 1.0, %v3541_v3  ;;  %vm202_vm8 = vcmp.eq.s32.totalorder %v2798_v20, %v2804_v23 }
  0x5d   :  { %v985_v6 = vand.u32 4294901760, %v301_v60  ;;  %2356 = vmatprep.subr.bf16.mxu0 %v3544_v1  ;;  %v1678_v10 = vsel %vm135_vm7, 1.0, %v3541_v3  ;;  %v182_v14 = vsub.f32 %v1661_v63, %v1677_v5  ;;  %vm203_vm9 = vcmp.eq.s32.totalorder %v2810_v26, %v2804_v23 }
  0x5e   :  { %v3059_v31 = vsub.f32 %v300_v19, %v982_v4  ;;  %v183_v36 = vsub.f32 %v1662_v2, %v1678_v10  ;;  %v1693_v37 = vsel %vm202_vm8, 1.0, %v3541_v3  ;;  %v1694_v40 = vsel %vm203_vm9, 1.0, %v3541_v3 }
  0x5f   :  { %v3063_v41 = vpack.c.bf16 %v985_v6, %v982_v4  ;;  %v3065_v47 = vsub.f32 %v301_v60, %v985_v6  ;;  %v344_v12 = vand.u32 4294901760, %v182_v14  ;;  %vm254_vm10 = vcmp.eq.s32.totalorder %v2798_v20, %v2806_v24 }
  0x60   :  { %v347_v49 = vand.u32 4294901760, %v183_v36  ;;  %vm255_vm11 = vcmp.eq.s32.totalorder %v2810_v26, %v2806_v24  ;;  %v1709_v55 = vsel %vm254_vm10, 1.0, %v3541_v3  ;;  %vm84_vm12 = vcmp.eq.s32.totalorder %v2812_v27, %v2800_v21 }
  0x61   :  { %3609 = vst [vmem:[#allocation22_spill] sm:$0xff] %v3063_v41  ;;  %2499 = vmatpush3.bf16.msra.mxu1 %v3063_v41  ;;  %v3075_v19 = vsub.f32 %v182_v14, %v344_v12  ;;  %v1710_v60 = vsel %vm255_vm11, 1.0, %v3541_v3  ;;  %v302_v63 = vsub.f32 %v1693_v37, %v1709_v55  ;;  %vm85_vm13 = vcmp.eq.s32.totalorder %v2814_v28, %v2800_v21 }
  0x62   :  { %2500 = vmatprep.subr.bf16.mxu1 %v3544_v1  ;;  %v3081_v20 = vpack.c.bf16 %v347_v49, %v344_v12  ;;  %v3083_v26 = vsub.f32 %v183_v36, %v347_v49  ;;  %v303_v2 = vsub.f32 %v1694_v40, %v1710_v60  ;;  %v1663_v4 = vsel %vm84_vm12, 1.0, %v3541_v3 }
  0x63   :  { %v988_v5 = vand.u32 4294901760, %v302_v63  ;;  %v1664_v6 = vsel %vm85_vm13, 1.0, %v3541_v3  ;;  %vm136_vm14 = vcmp.eq.s32.totalorder %v2812_v27, %v2802_v22  ;;  %vm137_vm15 = vcmp.eq.s32.totalorder %v2814_v28, %v2802_v22 }
  0x64   :  { %3610 = vst [vmem:[#allocation23_spill] sm:$0xff] %v3081_v20  ;;  %2358 = vmatpush3.bf16.msra.mxu0 %v3081_v20  ;;  %v991_v21 = vand.u32 4294901760, %v303_v2  ;;  %v1679_v10 = vsel %vm136_vm14, 1.0, %v3541_v3  ;;  %v1680_v14 = vsel %vm137_vm15, 1.0, %v3541_v3  ;;  %vm204_vm1 = vcmp.eq.s32.totalorder %v2812_v27, %v2804_v23 }
  0x65   :  { %v3096_v36 = vsub.f32 %v302_v63, %v988_v5  ;;  %2359 = vmatprep.subr.bf16.mxu0 %v3544_v1  ;;  %v184_v37 = vsub.f32 %v1663_v4, %v1679_v10  ;;  %v185_v40 = vsub.f32 %v1664_v6, %v1680_v14  ;;  %vm205_vm2 = vcmp.eq.s32.totalorder %v2814_v28, %v2804_v23 }
  0x66   :  { %v3101_v22 = vpack.c.bf16 %v991_v21, %v988_v5  ;;  %v3103_v12 = vsub.f32 %v303_v2, %v991_v21  ;;  %v1695_v49 = vsel %vm204_vm1, 1.0, %v3541_v3  ;;  %v1696_v55 = vsel %vm205_vm2, 1.0, %v3541_v3 }
  0x67   :  { %v350_v60 = vand.u32 4294901760, %v184_v37  ;;  %v353_v0 = vand.u32 4294901760, %v185_v40  ;;  %vm256_vm3 = vcmp.eq.s32.totalorder %v2812_v27, %v2806_v24  ;;  %vm257_vm4 = vcmp.eq.s32.totalorder %v2814_v28, %v2806_v24 }
  0x68   :  { %3611 = vst [vmem:[#allocation24_spill] sm:$0xff] %v3101_v22  ;;  %2502 = vmatpush3.bf16.msra.mxu1 %v3101_v22  ;;  %v1711_v23 = vsel %vm256_vm3, 1.0, %v3541_v3  ;;  %v1712_v63 = vsel %vm257_vm4, 1.0, %v3541_v3  ;;  %v3116_v2 = vsub.f32 %v2808_v25, %v2817_v29  ;;  %v3543_v4 = vand.u32 4294901760, %v2841_v45 }
  0x69   :  { %2503 = vmatprep.subr.bf16.mxu1 %v3544_v1  ;;  %v3120_v5 = vpack.c.bf16 %v353_v0, %v350_v60  ;;  %v3122_v27 = vsub.f32 %v184_v37, %v350_v60  ;;  %v3124_v6 = vsub.f32 %v185_v40, %v353_v0  ;;  %v304_v24 = vsub.f32 %v1695_v49, %v1711_v23 }
  0x6a   :  { %v305_v28 = vsub.f32 %v1696_v55, %v1712_v63  ;;  %v3127_v21 = vand.u32 4294901760, %v3116_v2  ;;  %v402_v25 = vsub.f32 %v2841_v45, %v3543_v4  ;;  %v3550_v10 = vand.u32 4294901760, %v2843_v46 }
  0x6b   :  { %3612 = vst [vmem:[#allocation25_spill] sm:$0xff] %v3120_v5  ;;  %2361 = vmatpush3.bf16.msra.mxu0 %v3120_v5  ;;  %v994_v14 = vand.u32 4294901760, %v304_v24  ;;  %v3557_v3 = vand.u32 4294901760, %v2859_v53  ;;  %v3558_v37 = vand.u32 4294901760, %v2861_v54  ;;  %v3561_v0 = vand.u32 4294901760, %v2883_v8 }
  0x6c   :  { %3613 = vst [vmem:[#allocation26_spill] sm:$0xff] %v3127_v21  ;;  %v997_v40 = vand.u32 4294901760, %v305_v28  ;;  %2362 = vmatprep.subr.bf16.mxu0 %v3544_v1  ;;  %v391_v49 = vsub.f32 %v3116_v2, %v3127_v21  ;;  %v403_v55 = vand.u32 4294901760, %v402_v25  ;;  %v409_v60 = vsub.f32 %v2843_v46, %v3550_v10 }
  0x6d   :  { %v3143_v23 = vsub.f32 %v304_v24, %v994_v14  ;;  %v1046_v63 = vsub.f32 %v2859_v53, %v3557_v3  ;;  %v1053_v4 = vsub.f32 %v2861_v54, %v3558_v37  ;;  %v416_v1 = vsub.f32 %v2883_v8, %v3561_v0 }
  0x6e   :  { %v3154_v21 = vpack.c.bf16 %v997_v40, %v994_v14  ;;  %v3156_v25 = vsub.f32 %v305_v28, %v997_v40  ;;  %v392_v5 = vand.u32 4294901760, %v391_v49  ;;  %v410_v10 = vand.u32 4294901760, %v409_v60 }
  0x6f   :  { %v1047_v24 = vand.u32 4294901760, %v1046_v63  ;;  %v1054_v22 = vand.u32 4294901760, %v1053_v4  ;;  %v417_v20 = vand.u32 4294901760, %v416_v1  ;;  %v3564_v41 = vand.u32 4294901760, %v2885_v9 }
  0x70   :  { %3614 = vst [vmem:[#allocation27_spill] sm:$0xff] %v3154_v21  ;;  %2505 = vmatpush3.bf16.msra.mxu1 %v3154_v21  ;;  %1951 = vmatmul.mubr.f32.vlgmr.msra.gmra.mrb[0].mxu0 %v392_v5  ;;  %v2363_v3 = vpack.c.bf16 %v410_v10, %v403_v55  ;;  %v3563_v37 = vand.u32 4294901760, %v2900_v34  ;;  %v3562_v56 = vand.u32 4294901760, %v2902_v35  ;;  %v3565_v14 = vand.u32 4294901760, %v2916_v42 }
  0x71   :  { %v3615_v0 = vmov 0.0|0.0   ;;  %v2507_v28 = vpack.c.bf16 %v1054_v22, %v1047_v24  ;;  %v423_v4 = vsub.f32 %v2885_v9, %v3564_v41  ;;  %v3566_v1 = vand.u32 4294901760, %v2923_v48 }
  0x72   :  { %2506 = vmatprep.subr.bf16.mxu1 %v3615_v0  ;;  %v3569_v40 = vand.u32 4294901760, %v2936_v58  ;;  %v3616_v49 = vmov 0.0   ;;  %2364 = vmatpush3.bf16.msra.mxu0 %v2363_v3  ;;  %v1060_v10 = vsub.f32 %v2900_v34, %v3563_v37  ;;  %v1067_v22 = vsub.f32 %v2902_v35, %v3562_v56 }
  0x73   :  { %1985 = vmatprep.mubr.msk.f32.mxu0 %vm2729_vm0, %v3616_v49  ;;  %v430_v55 = vsub.f32 %v2916_v42, %v3565_v14  ;;  %v3570_v60 = vand.u32 4294901760, %v2943_v62  ;;  %2161 = vmatmul.mubr.f32.vlgmr.msra.gmra.mrb[0].mxu1 %v392_v5  ;;  %v424_v63 = vand.u32 4294901760, %v423_v4  ;;  %v437_v3 = vsub.f32 %v2923_v48, %v3566_v1 }
  0x74   :  { %2365 = vmatprep.subr.bf16.mxu0 %v3615_v0  ;;  %v1074_v24 = vsub.f32 %v2936_v58, %v3569_v40  ;;  %v3588_v56 = vand.u32 4294901760, %v2961_v13  ;;  %2508 = vmatpush3.bf16.msra.mxu1 %v2507_v28  ;;  %v1061_v37 = vand.u32 4294901760, %v1060_v10  ;;  %v1068_v41 = vand.u32 4294901760, %v1067_v22 }
  0x75   :  { %v431_v14 = vand.u32 4294901760, %v430_v55  ;;  %v1081_v5 = vsub.f32 %v2943_v62, %v3570_v60  ;;  %2195 = vmatprep.mubr.msk.f32.mxu1 %vm2729_vm0, %v3616_v49  ;;  %2509 = vmatprep.subr.bf16.mxu1 %v3615_v0  ;;  %v2366_v4 = vpack.c.bf16 %v424_v63, %v417_v20  ;;  %v438_v1 = vand.u32 4294901760, %v437_v3 }
  0x76   :  { %v1075_v21 = vand.u32 4294901760, %v1074_v24  ;;  %v444_v40 = vsub.f32 %v2961_v13, %v3588_v56  ;;  %v2510_v28 = vpack.c.bf16 %v1068_v41, %v1061_v37  ;;  %v3582_v22 = vand.u32 4294901760, %v2963_v30 }
  0x77   :  { %v1082_v10 = vand.u32 4294901760, %v1081_v5  ;;  %v3581_v55 = vand.u32 4294901760, %v2979_v43  ;;  %2367 = vmatpush3.bf16.msra.mxu0 %v2366_v4  ;;  %v2369_v60 = vpack.c.bf16 %v438_v1, %v431_v14  ;;  %v3577_v15 = vand.u32 4294901760, %v2985_v51 }
  0x78   :  { %v445_v38 = vand.u32 4294901760, %v444_v40  ;;  %v3578_v50 = vand.u32 4294901760, %v2995_v59  ;;  %2511 = vmatpush3.bf16.msra.mxu1 %v2510_v28  ;;  %2368 = vmatprep.subr.bf16.mxu0 %v3615_v0  ;;  %v451_v41 = vsub.f32 %v2963_v30, %v3582_v22  ;;  %v3579_v63 = vand.u32 4294901760, %v3003_v17 }
  0x79   :  { %v2513_v20 = vpack.c.bf16 %v1082_v10, %v1075_v21  ;;  %v1088_v37 = vsub.f32 %v2979_v43, %v3581_v55  ;;  %2512 = vmatprep.subr.bf16.mxu1 %v3615_v0  ;;  %v1095_v14 = vsub.f32 %v2985_v51, %v3577_v15  ;;  %v3580_v1 = vand.u32 4294901760, %v3016_v32 }
  0x7a   :  { %v458_v21 = vsub.f32 %v2995_v59, %v3578_v50  ;;  %v3583_v40 = vand.u32 4294901760, %v3023_v39  ;;  %v452_v3 = vand.u32 4294901760, %v451_v41  ;;  %v465_v5 = vsub.f32 %v3003_v17, %v3579_v63 }
  0x7b   :  { %v1089_v24 = vand.u32 4294901760, %v1088_v37  ;;  %v3587_v4 = vand.u32 4294901760, %v3041_v18  ;;  %2370 = vmatpush3.bf16.msra.mxu0 %v2369_v60  ;;  %v1096_v28 = vand.u32 4294901760, %v1095_v14  ;;  %v1102_v15 = vsub.f32 %v3016_v32, %v3580_v1 }
  0x7c   :  { %v459_v10 = vand.u32 4294901760, %v458_v21  ;;  %v1109_v50 = vsub.f32 %v3023_v39, %v3583_v40  ;;  %2514 = vmatpush3.bf16.msra.mxu1 %v2513_v20  ;;  %2371 = vmatprep.subr.bf16.mxu0 %v3615_v0  ;;  %v2372_v41 = vpack.c.bf16 %v452_v3, %v445_v38  ;;  %v466_v37 = vand.u32 4294901760, %v465_v5 }
  0x7d   :  { %v472_v63 = vsub.f32 %v3041_v18, %v3587_v4  ;;  %v3586_v60 = vand.u32 4294901760, %v3043_v57  ;;  %2515 = vmatprep.subr.bf16.mxu1 %v3615_v0  ;;  %v2516_v14 = vpack.c.bf16 %v1096_v28, %v1089_v24  ;;  %v1103_v21 = vand.u32 4294901760, %v1102_v15 }
  0x7e   :  { %v1110_v1 = vand.u32 4294901760, %v1109_v50  ;;  %v3584_v55 = vand.u32 4294901760, %v3059_v31  ;;  %v2375_v22 = vpack.c.bf16 %v466_v37, %v459_v10  ;;  %v3585_v20 = vand.u32 4294901760, %v3065_v47 }
  0x7f   :  { %v473_v40 = vand.u32 4294901760, %v472_v63  ;;  %v479_v38 = vsub.f32 %v3043_v57, %v3586_v60  ;;  %2373 = vmatpush3.bf16.msra.mxu0 %v2372_v41  ;;  %v3589_v24 = vand.u32 4294901760, %v3075_v19  ;;  %v492_v50 = vand.u32 4294901760, %v3083_v26 }
  0x80   :  { %v2519_v3 = vpack.c.bf16 %v1110_v1, %v1103_v21  ;;  %v1116_v5 = vsub.f32 %v3059_v31, %v3584_v55  ;;  %2517 = vmatpush3.bf16.msra.mxu1 %v2516_v14  ;;  %2374 = vmatprep.subr.bf16.mxu0 %v3615_v0  ;;  %v1123_v63 = vsub.f32 %v3065_v47, %v3585_v20  ;;  %v1129_v28 = vand.u32 4294901760, %v3096_v36 }
  0x81   :  { %v480_v15 = vand.u32 4294901760, %v479_v38  ;;  %v1136_v1 = vand.u32 4294901760, %v3103_v12  ;;  %2518 = vmatprep.subr.bf16.mxu1 %v3615_v0  ;;  %v486_v41 = vsub.f32 %v3075_v19, %v3589_v24  ;;  %v493_v37 = vsub.f32 %v3083_v26, %v492_v50 }
  0x82   :  { %v1117_v10 = vand.u32 4294901760, %v1116_v5  ;;  %v499_v14 = vand.u32 4294901760, %v3122_v27  ;;  %v1124_v38 = vand.u32 4294901760, %v1123_v63  ;;  %v1130_v55 = vsub.f32 %v3096_v36, %v1129_v28 }
  0x83   :  { %v2378_v21 = vpack.c.bf16 %v480_v15, %v473_v40  ;;  %v1137_v20 = vsub.f32 %v3103_v12, %v1136_v1  ;;  %2376 = vmatpush3.bf16.msra.mxu0 %v2375_v22  ;;  %v487_v60 = vand.u32 4294901760, %v486_v41  ;;  %v494_v4 = vand.u32 4294901760, %v493_v37 }
  0x84   :  { %v500_v56 = vsub.f32 %v3122_v27, %v499_v14  ;;  %v506_v5 = vand.u32 4294901760, %v3124_v6  ;;  %2520 = vmatpush3.bf16.msra.mxu1 %v2519_v3  ;;  %2377 = vmatprep.subr.bf16.mxu0 %v3615_v0  ;;  %v2522_v24 = vpack.c.bf16 %v1124_v38, %v1117_v10  ;;  %v1131_v16 = vand.u32 4294901760, %v1130_v55 }
  0x85   :  { %v1138_v61 = vand.u32 4294901760, %v1137_v20  ;;  %v1143_v40 = vand.u32 4294901760, %v3143_v23  ;;  %2521 = vmatprep.subr.bf16.mxu1 %v3615_v0  ;;  %v1150_v22 = vand.u32 4294901760, %v3156_v25  ;;  %v2381_v41 = vpack.c.bf16 %v494_v4, %v487_v60 }
  0x86   :  { %v507_v15 = vsub.f32 %v3124_v6, %v506_v5  ;;  %v501_v37 = vand.u32 4294901760, %v500_v56  ;;  %v2387_v7 = vpack.c.bf16 %v2843_v46, %v2841_v45  ;;  %v3617_v56 = vand.u32 4294901760, %v2841_v45 }
  0x87   :  { %v1144_v63 = vsub.f32 %v3143_v23, %v1143_v40  ;;  %2379 = vmatpush3.bf16.msra.mxu0 %v2378_v21  ;;  %v1151_v3 = vsub.f32 %v3156_v25, %v1150_v22  ;;  %v2525_v55 = vpack.c.bf16 %v1138_v61, %v1131_v16  ;;  %v3618_v4 = vand.u32 4294901760, %v2843_v46 }
  0x88   :  { %v508_v11 = vand.u32 4294901760, %v507_v15  ;;  %2523 = vmatpush3.bf16.msra.mxu1 %v2522_v24  ;;  %2380 = vmatprep.subr.bf16.mxu0 %v3615_v0  ;;  %v3619_v61 = vand.u32 4294901760, %v2859_v53  ;;  %v3620_v16 = vand.u32 4294901760, %v2861_v54  ;;  %v3622_v21 = vand.u32 4294901760, %v2885_v9 }
  0x89   :  { %v1145_v20 = vand.u32 4294901760, %v1144_v63  ;;  %2524 = vmatprep.subr.bf16.mxu1 %v3615_v0  ;;  %v1152_v10 = vand.u32 4294901760, %v1151_v3  ;;  %v3277_v60 = vpack.c.bf16 %v3618_v4, %v3617_v56  ;;  %v3623_v45 = vand.u32 4294901760, %v2900_v34 }
  0x8a   :  { %v2384_v38 = vpack.c.bf16 %v508_v11, %v501_v37  ;;  %v3283_v24 = vpack.c.bf16 %v3620_v16, %v3619_v61  ;;  %v3621_v11 = vand.u32 4294901760, %v2883_v8  ;;  %v3624_v46 = vand.u32 4294901760, %v2902_v35 }
  0x8b   :  { %2382 = vmatpush3.bf16.msra.mxu0 %v2381_v41  ;;  %v2528_v33 = vpack.c.bf16 %v1152_v10, %v1145_v20  ;;  %v3625_v41 = vand.u32 4294901760, %v2916_v42  ;;  %v3626_v37 = vand.u32 4294901760, %v2923_v48  ;;  %v3628_v20 = vand.u32 4294901760, %v2943_v62 }
  0x8c   :  { %2526 = vmatpush3.bf16.msra.mxu1 %v2525_v55  ;;  %2383 = vmatprep.subr.bf16.mxu0 %v3615_v0  ;;  %v3289_v15 = vpack.c.bf16 %v3622_v21, %v3621_v11  ;;  %v3296_v63 = vpack.c.bf16 %v3624_v46, %v3623_v45  ;;  %v3627_v55 = vand.u32 4294901760, %v2936_v58  ;;  %v3629_v56 = vand.u32 4294901760, %v2961_v13 }
  0x8d   :  { %2527 = vmatprep.subr.bf16.mxu1 %v3615_v0  ;;  %v3302_v3 = vpack.c.bf16 %v3626_v37, %v3625_v41  ;;  %v3630_v4 = vand.u32 4294901760, %v2963_v30  ;;  %v3632_v16 = vand.u32 4294901760, %v2979_v43  ;;  %v3633_v11 = vand.u32 4294901760, %v2985_v51 }
  0x8e   :  { %v3308_v10 = vpack.c.bf16 %v3628_v20, %v3627_v55  ;;  %v3635_v45 = vand.u32 4294901760, %v2995_v59  ;;  %v3636_v46 = vand.u32 4294901760, %v3003_v17  ;;  %v3638_v37 = vand.u32 4294901760, %v3016_v32 }
  0x8f   :  { %v3314_v61 = vpack.c.bf16 %v3630_v4, %v3629_v56  ;;  %v3320_v21 = vpack.c.bf16 %v3633_v11, %v3632_v16  ;;  %v3639_v55 = vand.u32 4294901760, %v3023_v39  ;;  %v3640_v56 = vand.u32 4294901760, %v3041_v18  ;;  %2385 = vmatpush3.bf16.msra.mxu0 %v2384_v38 }
  0x90   :  { %v3326_v41 = vpack.c.bf16 %v3636_v46, %v3635_v45  ;;  %v3641_v4 = vand.u32 4294901760, %v3043_v57  ;;  %v3642_v16 = vand.u32 4294901760, %v3059_v31  ;;  %v3643_v11 = vand.u32 4294901760, %v3065_v47  ;;  %2529 = vmatpush3.bf16.msra.mxu1 %v2528_v33  ;;  %2386 = vmatprep.subr.bf16.mxu0 %v3615_v0 }
  0x91   :  { %3631 = vst [vmem:[#allocation28_spill] sm:$0xff] %v3314_v61  ;;  %3634 = vst [vmem:[#allocation29_spill] sm:$0xff] %v3320_v21  ;;  %v3332_v20 = vpack.c.bf16 %v3639_v55, %v3638_v37  ;;  %v3644_v45 = vand.u32 4294901760, %v3075_v19  ;;  %v3352_v37 = vpack.c.bf16 %v506_v5, %v499_v14  ;;  %v2531_v38 = vpack.c.bf16 %v2861_v54, %v2859_v53 }
  0x92   :  { %3637 = vst [vmem:[#allocation30_spill] sm:$0xff] %v3326_v41  ;;  %v3338_v61 = vpack.c.bf16 %v3641_v4, %v3640_v56  ;;  %v3344_v21 = vpack.c.bf16 %v3643_v11, %v3642_v16  ;;  %v3350_v41 = vpack.c.bf16 %v1136_v1, %v1129_v28  ;;  %v3357_v55 = vpack.c.bf16 %v1150_v22, %v1143_v40 }
  0x93   :  { %v3348_v46 = vpack.c.bf16 %v492_v50, %v3644_v45  ;;  %2530 = vmatprep.subr.bf16.mxu1 %v3615_v0  ;;  %1986 = vmatmul.mubr.f32.vlgmr.msra.gmra.mrb[0].mxu0 %v2817_v29  ;;  %v2390_v50 = vpack.c.bf16 %v2885_v9, %v2883_v8  ;;  %v2534_v33 = vpack.c.bf16 %v2902_v35, %v2900_v34 }
  0x94   :  { %2388 = vmatpush3.bf16.msra.mxu0 %v2387_v7  ;;  %2196 = vmatmul.mubr.f32.vlgmr.msra.gmra.mrb[0].mxu1 %v2817_v29  ;;  %v2393_v53 = vpack.c.bf16 %v2923_v48, %v2916_v42  ;;  %v2537_v54 = vpack.c.bf16 %v2943_v62, %v2936_v58  ;;  %v2396_v7 = vpack.c.bf16 %v2963_v30, %v2961_v13  ;;  %v3645_v30 = vld [vmem:[#allocation13_spill] sm:$0xff] }
  0x95   :  { %2532 = vmatpush3.bf16.msra.mxu1 %v2531_v38  ;;  %2389 = vmatprep.subr.bf16.mxu0 %v3615_v0  ;;  %v2540_v8 = vpack.c.bf16 %v2985_v51, %v2979_v43  ;;  %v2399_v9 = vpack.c.bf16 %v3003_v17, %v2995_v59  ;;  %v2543_v34 = vpack.c.bf16 %v3023_v39, %v3016_v32  ;;  %v3646_v43 = vld [vmem:[#allocation14_spill] sm:$0xff]  ;;  %v3647_v51 = vld [vmem:[#allocation15_spill] sm:$0xff]  ;;  %v3648_v59 = vld [vmem:[#allocation16_spill] sm:$0xff] }
  0x96   :  { %2533 = vmatprep.subr.bf16.mxu1 %v3615_v0  ;;  %2020 = vmatprep.mubr.msk.f32.mxu0 %vm2729_vm0, %v3616_v49  ;;  %v2402_v35 = vpack.c.bf16 %v3043_v57, %v3041_v18  ;;  %v2546_v42 = vpack.c.bf16 %v3065_v47, %v3059_v31  ;;  %v2405_v48 = vpack.c.bf16 %v3083_v26, %v3075_v19  ;;  %v3649_v17 = vld [vmem:[#allocation17_spill] sm:$0xff]  ;;  %v3650_v32 = vld [vmem:[#allocation18_spill] sm:$0xff]  ;;  %v3651_v39 = vld [vmem:[#allocation19_spill] sm:$0xff] }
  0x97   :  { %2230 = vmatprep.mubr.msk.f32.mxu1 %vm2729_vm0, %v3616_v49  ;;  %v2549_v58 = vpack.c.bf16 %v3103_v12, %v3096_v36  ;;  %v2408_v62 = vpack.c.bf16 %v3124_v6, %v3122_v27  ;;  %v2552_v13 = vpack.c.bf16 %v3156_v25, %v3143_v23  ;;  %v3652_v18 = vld [vmem:[#allocation20_spill] sm:$0xff]  ;;  %v3653_v57 = vld [vmem:[#allocation21_spill] sm:$0xff]  ;;  %v3654_v31 = vld [vmem:[#allocation22_spill] sm:$0xff] }
  0x98   :  { %2391 = vmatpush3.bf16.msra.mxu0 %v2390_v50  ;;  %v3655_v47 = vld [vmem:[#allocation23_spill] sm:$0xff]  ;;  %v3656_v19 = vld [vmem:[#allocation24_spill] sm:$0xff]  ;;  %v3657_v26 = vld [vmem:[#allocation25_spill] sm:$0xff] }
  0x99   :  { %2535 = vmatpush3.bf16.msra.mxu1 %v2534_v33  ;;  %2392 = vmatprep.subr.bf16.mxu0 %v3615_v0  ;;  %v3658_v36 = vld [vmem:[#allocation27_spill] sm:$0xff]  ;;  %v3659_v12 = vld [vmem:[#allocation26_spill] sm:$0xff]  ;;  %v3661_v27 = vld [vmem:[#allocation29_spill] sm:$0xff] }
  0x9a   :  { %2536 = vmatprep.subr.bf16.mxu1 %v3615_v0  ;;  %v3662_v6 = vld [vmem:[#allocation30_spill] sm:$0xff] }
  0x9c   :  { %2394 = vmatpush3.bf16.msra.mxu0 %v2393_v53 }
  0x9d   :  { %2538 = vmatpush3.bf16.msra.mxu1 %v2537_v54  ;;  %2395 = vmatprep.subr.bf16.mxu0 %v3615_v0 }
  0x9e   :  { %2539 = vmatprep.subr.bf16.mxu1 %v3615_v0 }
  0xa0   :  { %2397 = vmatpush3.bf16.msra.mxu0 %v2396_v7 }
  0xa1   :  { %2541 = vmatpush3.bf16.msra.mxu1 %v2540_v8  ;;  %2398 = vmatprep.subr.bf16.mxu0 %v3615_v0 }
  0xa2   :  { %2542 = vmatprep.subr.bf16.mxu1 %v3615_v0 }
  0xa4   :  { %2400 = vmatpush3.bf16.msra.mxu0 %v2399_v9 }
  0xa5   :  { %2544 = vmatpush3.bf16.msra.mxu1 %v2543_v34  ;;  %2401 = vmatprep.subr.bf16.mxu0 %v3615_v0 }
  0xa6   :  { %2545 = vmatprep.subr.bf16.mxu1 %v3615_v0 }
  0xa8   :  { %2403 = vmatpush3.bf16.msra.mxu0 %v2402_v35 }
  0xa9   :  { %2547 = vmatpush3.bf16.msra.mxu1 %v2546_v42  ;;  %2404 = vmatprep.subr.bf16.mxu0 %v3615_v0 }
  0xaa   :  { %2548 = vmatprep.subr.bf16.mxu1 %v3615_v0 }
  0xac   :  { %2406 = vmatpush3.bf16.msra.mxu0 %v2405_v48 }
  0xad   :  { %2550 = vmatpush3.bf16.msra.mxu1 %v2549_v58  ;;  %2407 = vmatprep.subr.bf16.mxu0 %v3615_v0 }
  0xae   :  { %2551 = vmatprep.subr.bf16.mxu1 %v3615_v0 }
  0xb0   :  { %2409 = vmatpush3.bf16.msra.mxu0 %v2408_v62 }
  0xb1   :  { %2553 = vmatpush3.bf16.msra.mxu1 %v2552_v13  ;;  %2410 = vmatprep.subr.bf16.mxu0 %v3615_v0 }
  0xb2   :  { %2554 = vmatprep.subr.bf16.mxu1 %v3615_v0 }
  0xb3   :  { %2021 = vmatmul.mubr.f32.vlgmr.msra.gmra.mrb[0].mxu0 %v3116_v2 }
  0xb4   :  { %2412 = vmatpush3.bf16.msra.mxu0 %v2839_v44  ;;  %2231 = vmatmul.mubr.f32.vlgmr.msra.gmra.mrb[0].mxu1 %v3116_v2  ;;  %v3660_v2 = vld [vmem:[#allocation28_spill] sm:$0xff] }
  0xb5   :  { %2556 = vmatpush3.bf16.msra.mxu1 %v2857_v52  ;;  %2413 = vmatprep.subr.bf16.mxu0 %v3615_v0 }
  0xb6   :  { %2557 = vmatprep.subr.bf16.mxu1 %v3615_v0  ;;  %2055 = vmatprep.mubr.msk.f32.mxu0 %vm2729_vm0, %v3616_v49 }
  0xb7   :  { %2265 = vmatprep.mubr.msk.f32.mxu1 %vm2729_vm0, %v3616_v49 }
  0xb8   :  { %2415 = vmatpush3.bf16.msra.mxu0 %v3645_v30 }
  0xb9   :  { %2559 = vmatpush3.bf16.msra.mxu1 %v3646_v43  ;;  %2416 = vmatprep.subr.bf16.mxu0 %v3615_v0 }
  0xba   :  { %2560 = vmatprep.subr.bf16.mxu1 %v3615_v0 }
  0xbc   :  { %2418 = vmatpush3.bf16.msra.mxu0 %v3647_v51 }
  0xbd   :  { %2562 = vmatpush3.bf16.msra.mxu1 %v3648_v59  ;;  %2419 = vmatprep.subr.bf16.mxu0 %v3615_v0 }
  0xbe   :  { %2563 = vmatprep.subr.bf16.mxu1 %v3615_v0 }
  0xc0   :  { %2421 = vmatpush3.bf16.msra.mxu0 %v3649_v17 }
  0xc1   :  { %2565 = vmatpush3.bf16.msra.mxu1 %v3650_v32  ;;  %2422 = vmatprep.subr.bf16.mxu0 %v3615_v0 }
  0xc2   :  { %2566 = vmatprep.subr.bf16.mxu1 %v3615_v0 }
  0xc4   :  { %2424 = vmatpush3.bf16.msra.mxu0 %v3651_v39 }
  0xc5   :  { %2568 = vmatpush3.bf16.msra.mxu1 %v3652_v18  ;;  %2425 = vmatprep.subr.bf16.mxu0 %v3615_v0 }
  0xc6   :  { %2569 = vmatprep.subr.bf16.mxu1 %v3615_v0 }
  0xc8   :  { %2427 = vmatpush3.bf16.msra.mxu0 %v3653_v57 }
  0xc9   :  { %2571 = vmatpush3.bf16.msra.mxu1 %v3654_v31  ;;  %2428 = vmatprep.subr.bf16.mxu0 %v3615_v0 }
  0xca   :  { %2572 = vmatprep.subr.bf16.mxu1 %v3615_v0 }
  0xcc   :  { %2430 = vmatpush3.bf16.msra.mxu0 %v3655_v47 }
  0xcd   :  { %2574 = vmatpush3.bf16.msra.mxu1 %v3656_v19  ;;  %2431 = vmatprep.subr.bf16.mxu0 %v3615_v0 }
  0xce   :  { %2575 = vmatprep.subr.bf16.mxu1 %v3615_v0 }
  0xd0   :  { %2433 = vmatpush3.bf16.msra.mxu0 %v3657_v26 }
  0xd1   :  { %2577 = vmatpush3.bf16.msra.mxu1 %v3658_v36  ;;  %2434 = vmatprep.subr.bf16.mxu0 %v3615_v0 }
  0xd2   :  { %2578 = vmatprep.subr.bf16.mxu1 %v3615_v0 }
  0xd3   :  { %2056 = vmatmul.mubr.f32.vlgmr.msra.gmra.mrb[0].mxu0 %v3659_v12 }
  0xd4   :  { %2436 = vmatpush3.bf16.msra.mxu0 %v3277_v60  ;;  %2266 = vmatmul.mubr.f32.vlgmr.msra.gmra.mrb[0].mxu1 %v3659_v12 }
  0xd5   :  { %2580 = vmatpush3.bf16.msra.mxu1 %v3283_v24  ;;  %2437 = vmatprep.subr.bf16.mxu0 %v3615_v0 }
  0xd6   :  { %2581 = vmatprep.subr.bf16.mxu1 %v3615_v0  ;;  %2090 = vmatprep.mubr.msk.f32.mxu0 %vm2729_vm0, %v3616_v49 }
  0xd7   :  { %2300 = vmatprep.mubr.msk.f32.mxu1 %vm2729_vm0, %v3616_v49 }
  0xd8   :  { %2439 = vmatpush3.bf16.msra.mxu0 %v3289_v15 }
  0xd9   :  { %2583 = vmatpush3.bf16.msra.mxu1 %v3296_v63  ;;  %2440 = vmatprep.subr.bf16.mxu0 %v3615_v0 }
  0xda   :  { %2584 = vmatprep.subr.bf16.mxu1 %v3615_v0 }
  0xdc   :  { %2442 = vmatpush3.bf16.msra.mxu0 %v3302_v3 }
  0xdd   :  { %2586 = vmatpush3.bf16.msra.mxu1 %v3308_v10  ;;  %2443 = vmatprep.subr.bf16.mxu0 %v3615_v0 }
  0xde   :  { %2587 = vmatprep.subr.bf16.mxu1 %v3615_v0 }
  0xe0   :  { %2445 = vmatpush3.bf16.msra.mxu0 %v3660_v2 }
  0xe1   :  { %2589 = vmatpush3.bf16.msra.mxu1 %v3661_v27  ;;  %2446 = vmatprep.subr.bf16.mxu0 %v3615_v0 }
  0xe2   :  { %2590 = vmatprep.subr.bf16.mxu1 %v3615_v0 }
  0xe4   :  { %2448 = vmatpush3.bf16.msra.mxu0 %v3662_v6 }
  0xe5   :  { %2592 = vmatpush3.bf16.msra.mxu1 %v3332_v20  ;;  %2449 = vmatprep.subr.bf16.mxu0 %v3615_v0  ;;  %v3663_v20 = vlaneseq }
  0xe6   :  { %2593 = vmatprep.subr.bf16.mxu1 %v3615_v0 }
  0xe7   :  { %v1624_v56 = vand.u32 127, %v3663_v20 }
  0xe8   :  { %2451 = vmatpush3.bf16.msra.mxu0 %v3338_v61 }
  0xe9   :  { %2595 = vmatpush3.bf16.msra.mxu1 %v3344_v21  ;;  %2452 = vmatprep.subr.bf16.mxu0 %v3615_v0  ;;  %vm1628_vm5 = vcmp.lt.s32.totalorder %v1624_v56, 16 }
  0xea   :  { %2596 = vmatprep.subr.bf16.mxu1 %v3615_v0 }
  0xec   :  { %2454 = vmatpush3.bf16.msra.mxu0 %v3348_v46 }
  0xed   :  { %2598 = vmatpush3.bf16.msra.mxu1 %v3350_v41  ;;  %2455 = vmatprep.subr.bf16.mxu0 %v3615_v0 }
  0xee   :  { %2599 = vmatprep.subr.bf16.mxu1 %v3615_v0 }
  0xf0   :  { %2457 = vmatpush3.bf16.msra.mxu0 %v3352_v37 }
  0xf1   :  { %2601 = vmatpush3.bf16.msra.mxu1 %v3357_v55  ;;  %2458 = vmatprep.subr.bf16.mxu0 %v3615_v0 }
  0xf2   :  { %2602 = vmatprep.subr.bf16.mxu1 %v3615_v0 }
  0xf3   :  { %2091 = vmatmul.mubr.f32.vlgmr.msra.gmra.mrb[0].mxu0 %v2817_v29 }
  0xf4   :  { %2460 = vmatpush3.bf16.msra.mxu0 %v2839_v44  ;;  %2301 = vmatmul.mubr.f32.vlgmr.msra.gmra.mrb[0].mxu1 %v2817_v29 }
  0xf5   :  { %2604 = vmatpush3.bf16.msra.mxu1 %v2857_v52  ;;  %2461 = vmatprep.subr.bf16.mxu0 %v3615_v0 }
  0xf6   :  { %2605 = vmatprep.subr.bf16.mxu1 %v3615_v0  ;;  %2125 = vmatprep.mubr.msk.f32.mxu0 %vm2729_vm0, %v3616_v49 }
  0xf7   :  { %2335 = vmatprep.mubr.msk.f32.mxu1 %vm2729_vm0, %v3616_v49  ;;  %vm1601_vm0 = vcmask 1043456  }
  0xf8   :  { %2463 = vmatpush3.bf16.msra.mxu0 %v3645_v30 }
  0xf9   :  { %2607 = vmatpush3.bf16.msra.mxu1 %v3646_v43  ;;  %2464 = vmatprep.subr.bf16.mxu0 %v3615_v0 }
  0xfa   :  { %2608 = vmatprep.subr.bf16.mxu1 %v3615_v0 }
  0xfc   :  { %2466 = vmatpush3.bf16.msra.mxu0 %v3647_v51 }
  0xfd   :  { %2610 = vmatpush3.bf16.msra.mxu1 %v3648_v59  ;;  %2467 = vmatprep.subr.bf16.mxu0 %v3615_v0 }
  0xfe   :  { %2611 = vmatprep.subr.bf16.mxu1 %v3615_v0 }
 0x100   :  { %2469 = vmatpush3.bf16.msra.mxu0 %v3649_v17 }
 0x101   :  { %2613 = vmatpush3.bf16.msra.mxu1 %v3650_v32  ;;  %2470 = vmatprep.subr.bf16.mxu0 %v3615_v0 }
 0x102   :  { %2614 = vmatprep.subr.bf16.mxu1 %v3615_v0 }
 0x104   :  { %2472 = vmatpush3.bf16.msra.mxu0 %v3651_v39 }
 0x105   :  { %2616 = vmatpush3.bf16.msra.mxu1 %v3652_v18  ;;  %2473 = vmatprep.subr.bf16.mxu0 %v3615_v0 }
 0x106   :  { %2617 = vmatprep.subr.bf16.mxu1 %v3615_v0 }
 0x108   :  { %2475 = vmatpush3.bf16.msra.mxu0 %v3653_v57 }
 0x109   :  { %2619 = vmatpush3.bf16.msra.mxu1 %v3654_v31  ;;  %2476 = vmatprep.subr.bf16.mxu0 %v3615_v0 }
 0x10a   :  { %2620 = vmatprep.subr.bf16.mxu1 %v3615_v0 }
 0x10c   :  { %2478 = vmatpush3.bf16.msra.mxu0 %v3655_v47 }
 0x10d   :  { %2622 = vmatpush3.bf16.msra.mxu1 %v3656_v19  ;;  %2479 = vmatprep.subr.bf16.mxu0 %v3615_v0 }
 0x10e   :  { %2623 = vmatprep.subr.bf16.mxu1 %v3615_v0 }
 0x110   :  { %2481 = vmatpush3.bf16.msra.mxu0 %v3657_v26 }
 0x111   :  { %2625 = vmatpush3.bf16.msra.mxu1 %v3658_v36 }
 0x113   :  { %2126 = vmatmul.mubr.f32.vlgmr.msra.gmra.mrb[0].mxu0 %v2817_v29 }
 0x114   :  { %2336 = vmatmul.mubr.f32.vlgmr.msra.gmra.mrb[0].mxu1 %v2817_v29 }
 0x1e6   :  { %v944_v44 = vpop.f32.mrb[0].mxu0 }
 0x1e7   :  { %v1599_v52 = vmul.f32 %v944_v44, %v944_v44  ;;  %v1588_v23 = vpop.f32.mrb[0].mxu1  ;;  %v2127_v25 = vpop.f32.mrb[1].mxu0 }
 0x1e8   :  { %v1600_v49 = vmul.f32 %v1588_v23, %v1588_v23  ;;  %v2337_v28 = vpop.f32.mrb[1].mxu1 }
 0x1e9   :  { %v1602_v14 = vsel %vm1601_vm0, %v1599_v52, 0.0 }
 0x1ea   :  { %v1610_v1 = vrot.slane %v1600_v49, 4  ;;  %v1603_v0 = vrot.slane %v1602_v14, 4 }
 0x1ec   :  { %v1612_v5 = vsel %vm1601_vm0, %v1610_v1, 0.0  ;;  %v1604_v24 = vadd.f32 %v1603_v0, %v1602_v14 }
 0x1ed   :  { %v1613_v40 = vrot.slane %v1612_v5, 4 }
 0x1ee   :  { %v1605_v3 = vrot.slane %v1604_v24, 2 }
 0x1ef   :  { %v1614_v22 = vadd.f32 %v1613_v40, %v1612_v5 }
 0x1f0   :  { %v1606_v29 = vadd.f32 %v1605_v3, %v1604_v24 }
 0x1f1   :  { %v1615_v60 = vrot.slane %v1614_v22, 2 }
 0x1f2   :  { %v1607_v61 = vrot.slane %v1606_v29, 1 }
 0x1f3   :  { %v1616_v15 = vadd.f32 %v1615_v60, %v1614_v22 }
 0x1f4   :  { %v1608_v21 = vadd.f32 %v1607_v61, %v1606_v29 }
 0x1f5   :  { %v1617_v63 = vrot.slane %v1616_v15, 1 }
 0x1f7   :  { %v1618_v10 = vadd.f32 %v1617_v63, %v1616_v15 }
 0x1f9   :  { %2652 = vrcp.f32 %v1618_v10 }
 0x203   :  { %v2653_v41 = vpop.eup %2652 }
 0x204   :  { %v1620_v4 = vmul.f32 %v2653_v41, %v1608_v21 }
 0x206   :  { %v1713_v16 = vadd.f32 -1.0, %v1620_v4 }
 0x208   :  { %v1622_v11 = vand.u32 2147483647, %v1713_v16 }
 0x20a   :  { %v1629_v45 = vsel %vm1628_vm5, %v1622_v11, 0.0 }
 0x20b   :  { %1630 = vadd.xlane.f32.xlu0 %v1629_v45 }
 0x298   :  { %v1631_v46 = vpop.xlane.xlu0 %1630 }
 0x299   :  { %1632 = vst [vmem:[#allocation9] sm:$0x1] %v1631_v46 }
 0x29a   :  { %2709 = shalt.err (!%p2706_p6)
}
 0x29b   :  { %s2710_s9 = scalar_lea.hbm %s3539_s2, 16 }
 0x29c   :  { %p2711_p7 = scmp.ne.s32.totalorder %s3539_s2, %s2710_s9  ;;  %p2714_p8 = scmp.lt.u32.totalorder %s2710_s9, %s3539_s2 }
 0x29e   :  { %p2716_p9 = pnand %p2714_p8, %p2711_p7 }
 0x2a0   :  { %2719 = shalt.err (!%p2716_p9)
}
 0x2a1   :  { %1642 = dma.vmem_to_hbm [thread:$0]  %s1640_s4, 16, %s3539_s2, [#allocation6]  }
 0x2a2   :  { %2724 = dma.done.wait [#allocation6], 16  }
 0x2a3   :  { %2725 = vsyncadd [#allocation6], 4294967280 }
 0x2a4   :  { %1646 = vsyncpa [#allocation5], 1 }
 0x2a5   :  { %1647 = vsyncpa [#allocation8], 1 }
 0x2a6   :  { %1648 = vsyncpa [#allocation6], 1 }

</bundles_post_ra>
